<compile_context>
chip_gen: v5e
topology: v5e:2x2
jax: 0.10.0
libtpu: 0.0.40
codegen_flags: <defaults>
</compile_context>

<pallas_src>
import functools

import numpy as np
import jax
import jax.numpy as jnp
from jax import lax
from jax.experimental import pallas as pl
from jax.experimental.pallas import tpu as pltpu


# --------------------- deterministic filter weights (numpy, no torch/cv2) ----
def get_gaussian_kernel(k=3, mu=0, sigma=1, normalize=True):
    gaussian_1D = np.linspace(-1, 1, k)
    x, y = np.meshgrid(gaussian_1D, gaussian_1D)
    distance = (x ** 2 + y ** 2) ** 0.5
    gaussian_2D = np.exp(-(distance - mu) ** 2 / (2 * sigma ** 2))
    gaussian_2D = gaussian_2D / (2 * np.pi * sigma ** 2)
    if normalize:
        gaussian_2D = gaussian_2D / np.sum(gaussian_2D)
    return gaussian_2D


def get_sobel_kernel(k=3):
    rng = np.linspace(-(k // 2), k // 2, k)
    x, y = np.meshgrid(rng, rng)
    num = x
    den = x ** 2 + y ** 2
    den[:, k // 2] = 1
    return num / den


_GAUSS = get_gaussian_kernel(3, 0, 1)
# mu=0 gaussian is rank-1 separable; its row sums are the normalized 1D factor.
_G1D = _GAUSS.sum(axis=1)
assert np.allclose(np.outer(_G1D, _G1D), _GAUSS)
_G0, _G1 = float(_G1D[0]), float(_G1D[1])

# Sobel-x == outer([0.5, 1, 0.5], [-1, 0, 1]); Sobel-y is its transpose.
assert np.allclose(np.outer([0.5, 1.0, 0.5], [-1.0, 0.0, 1.0]), get_sobel_kernel(3))

# Analytic replacement for the cv2 rotations in get_thin_kernels(): the i-th
# directional kernel is (+1 at center, -1 at the neighbour rotated i*45deg CCW),
# i.e. directional_i = grad_mag - grad_mag[. + dy_i, . + dx_i]  (zero padded).
_OFFSETS = [(0, 1), (-1, 1), (-1, 0), (-1, -1), (0, -1), (1, -1), (1, 0), (1, 1)]

# atan-free orientation binning (Mosaic has no atan lowering):
#   round(atan(gy/gx) * 8/pi + 4) % 8  ==  (#{m : gy/gx > tan((m-3.5)*pi/8)}) % 8
_ANGLE_THRESH = [float(np.tan((m - 3.5) * np.pi / 8.0)) for m in range(8)]

_HALO = 8  # conv cascade needs 3 halo rows; 8 keeps dynamic offsets 8-aligned


# ------------------------------------ kernel ---------------------------------
def _canny_kernel(img_ref, out_ref, *, tile_h, halo, w_valid):
    # img_ref: (1, C, H, Wp) resident full-image block
    # out_ref: (1, 1, tile_h, Wp) output tile
    _, C, H, Wp = img_ref.shape
    win = tile_h + 2 * halo

    if halo == 0:
        start = 0
    else:
        h_idx = pl.program_id(1)
        # Clamp the halo window inside the image: the window edge then coincides
        # with the image edge exactly where zero padding must apply.
        start = jnp.clip(h_idx * tile_h - halo, 0, H - win)
        start = pl.multiple_of(start, 8)

    # ---- boundary masks: zero reads that cross the (true) image border ----
    row = lax.broadcasted_iota(jnp.int32, (win, Wp), 0)
    col = lax.broadcasted_iota(jnp.int32, (win, Wp), 1)
    ok_below = row < win - 1       # reading row i+1 is valid
    ok_above = row >= 1            # reading row i-1 is valid
    ok_right = col < w_valid - 1   # reading col j+1 is valid
    ok_left = col >= 1             # reading col j-1 is valid

    # pltpu.roll follows np.roll: roll(x, s)[i] = x[(i - s) mod n]
    def below(x):    # y[i, j] = x[i+1, j]   (zero past the bottom edge)
        return jnp.where(ok_below, pltpu.roll(x, win - 1, 0), 0.0)

    def above(x):    # y[i, j] = x[i-1, j]
        return jnp.where(ok_above, pltpu.roll(x, 1, 0), 0.0)

    def rightof(x):  # y[i, j] = x[i, j+1]
        return jnp.where(ok_right, pltpu.roll(x, Wp - 1, 1), 0.0)

    def leftof(x):   # y[i, j] = x[i, j-1]
        return jnp.where(ok_left, pltpu.roll(x, 1, 1), 0.0)

    # ---- channel sum first (conv is linear): one blur + one sobel pass ----
    def load_ch(c):
        if halo == 0:
            return img_ref[0, c]
        return img_ref[0, c, pl.ds(start, win), :]

    xs = load_ch(0)
    for c in range(1, C):
        xs = xs + load_ch(c)

    # ---- separable gaussian blur (zero "same" padding at every stage) ----
    t = _G0 * (leftof(xs) + rightof(xs)) + _G1 * xs
    blur = _G0 * (above(t) + below(t)) + _G1 * t

    # ---- separable sobel; the two vertical shifts of `blur` are shared ----
    b_above = above(blur)
    b_below = below(blur)
    sx = 0.5 * (b_above + b_below) + blur     # vertical smoothing   [0.5, 1, 0.5]
    sy = b_below - b_above                    # vertical derivative  [-1, 0, 1]
    inv_c = jnp.float32(1.0 / C)
    grad_x = (rightof(sx) - leftof(sx)) * inv_c
    grad_y = (0.5 * (leftof(sy) + rightof(sy)) + sy) * inv_c

    grad_mag = jnp.sqrt(grad_x * grad_x + grad_y * grad_y)

    # ---- orientation bin:  round((atan(gy/gx)*360/pi + 180)/45) % 8 ----
    z = grad_y / grad_x
    kf = jnp.zeros_like(grad_mag)
    for thr in _ANGLE_THRESH:
        kf = kf + (z > thr).astype(jnp.float32)
    positive_idx = jnp.where(kf >= 8.0, kf - 8.0, kf)
    # gx == gy == 0 -> z is nan -> torch.atan gives nan -> no orientation matches
    positive_idx = jnp.where(jnp.isnan(z), jnp.float32(np.nan), positive_idx)

    # ---- directional "thin" convs collapse to shifted neighbours of grad_mag --
    g_above = above(grad_mag)
    g_below = below(grad_mag)
    nbr = {
        (0, 1): rightof(grad_mag), (0, -1): leftof(grad_mag),
        (-1, 0): g_above, (1, 0): g_below,
        (-1, 1): rightof(g_above), (-1, -1): leftof(g_above),
        (1, 1): rightof(g_below), (1, -1): leftof(g_below),
    }
    neighbors = [nbr[off] for off in _OFFSETS]

    # ---- non-maximum suppression (same loop as the reference forward()) ----
    thin = grad_mag
    for pos_i in range(4):
        neg_i = pos_i + 4
        oriented = jnp.logical_or(positive_idx == pos_i, positive_idx == neg_i)
        # min(directional[pos], directional[neg]) > 0,
        # with directional_i = grad_mag - neighbors[i]
        is_max = jnp.logical_and(grad_mag > neighbors[pos_i],
                                 grad_mag > neighbors[neg_i])
        to_remove = jnp.logical_and(jnp.logical_not(is_max), oriented)
        thin = jnp.where(to_remove, jnp.float32(0.0), thin)

    # TODO(synk): low/high-threshold + hysteresis branch of forward() (defaults
    # are None/False, so it is not exercised) is not implemented.

    if halo == 0:
        out_ref[0, 0] = thin
    else:
        local_off = pl.program_id(1) * tile_h - start
        out_ref[0, 0] = lax.dynamic_slice_in_dim(thin, local_off, tile_h, axis=0)


# ------------------------------------ wrapper --------------------------------
def _pick_tile_h(H):
    if H <= 256:
        return H
    for t in (256, 128, 64):
        if H % t == 0 and H >= t + 2 * _HALO:
            return t
    return H


def canny_filter(img, *, tile_h=None):
    B, C, H, W = img.shape
    img = img.astype(jnp.float32)

    # Lane-dense layout: pad W up to a multiple of 128.  Padded columns are
    # masked at the true border inside the kernel and sliced off below.
    Wp = ((W + 127) // 128) * 128
    if Wp != W:
        img = jnp.pad(img, ((0, 0), (0, 0), (0, 0), (0, Wp - W)))

    if tile_h is None:
        tile_h = _pick_tile_h(H)
    if tile_h >= H or H % tile_h != 0 or tile_h % 8 != 0 or H < tile_h + 2 * _HALO:
        tile_h, halo, n_th = H, 0, 1
    else:
        halo, n_th = _HALO, H // tile_h
    win = tile_h + 2 * halo

    kernel = functools.partial(_canny_kernel, tile_h=tile_h, halo=halo, w_valid=W)

    # Rough VMEM budget: double-buffered input/output blocks + ~14 live (win,Wp)
    # f32 temporaries.  Clamped so the limit is valid on v5e/v6e/v7x.
    vmem_est = 4 * (2 * C * H * Wp + 2 * tile_h * Wp + 16 * win * Wp) + (1 << 20)
    vmem_limit = int(min(max(vmem_est, 32 * 1024 * 1024), 64 * 1024 * 1024))

    out = pl.pallas_call(
        kernel,
        out_shape=jax.ShapeDtypeStruct((B, 1, H, Wp), jnp.float32),
        grid=(B, n_th),
        in_specs=[pl.BlockSpec((1, C, H, Wp), lambda b, h: (b, 0, 0, 0))],
        out_specs=pl.BlockSpec((1, 1, tile_h, Wp), lambda b, h: (b, 0, h, 0)),
        compiler_params=pltpu.CompilerParams(
            dimension_semantics=("parallel", "parallel"),
            vmem_limit_bytes=vmem_limit),
    )(img)
    # TODO(synk): for very large images the (1, C, H, Wp) input block should be
    # streamed with a manual halo DMA (memory_space=pl.ANY) instead of being
    # kept resident in VMEM; only intermediates are tile-sized here.
    if Wp != W:
        out = out[:, :, :, :W]
    return out


if __name__ == "__main__":
    key = jax.random.PRNGKey(0)
    img = jax.random.normal(key, (2, 4, 16, 16), dtype=jnp.float32)
    thin_edges = jax.block_until_ready(canny_filter(img))
    assert thin_edges.shape == (2, 1, 16, 16)
    assert thin_edges.dtype == jnp.float32
    assert bool(jnp.all(jnp.isfinite(thin_edges)))

    # The H-tiled (halo) path must agree with the single-tile path.
    img2 = jax.random.normal(jax.random.PRNGKey(1), (1, 3, 128, 128), jnp.float32)
    full = jax.block_until_ready(canny_filter(img2))               # 1 tile, no halo
    tiled = jax.block_until_ready(canny_filter(img2, tile_h=64))   # 2 tiles + halo
    assert jnp.allclose(full, tiled, atol=1e-5, rtol=1e-5)

    print("KERNEL_OK")
</pallas_src>

<mosaic_0001>
module attributes {stable_mosaic.version = 11 : i64} {
  func.func @_canny_kernel(%arg0: i32, %arg1: i32, %arg2: memref<1x4x16x128xf32, #tpu.memory_space<vmem>>, %arg3: memref<1x1x16x128xf32, #tpu.memory_space<vmem>>) attributes {dimension_semantics = [#tpu.dimension_semantics<parallel>, #tpu.dimension_semantics<parallel>], iteration_bounds = array<i64: 2, 1>, scalar_prefetch = 0 : i64, scratch_operands = 0 : i64, tpu.core_type = #tpu.core_type<tc>, window_params = [{transform_indices = @transform_0, window_bounds = array<i64: 1, 4, 16, 128>}, {transform_indices = @transform_1, window_bounds = array<i64: 1, 1, 16, 128>}]} {
    %0 = tpu.iota {dimensions = array<i32: 0>} : vector<16x128xi32>
    %1 = tpu.iota {dimensions = array<i32: 1>} : vector<16x128xi32>
    %c15_i32 = arith.constant 15 : i32
    %2 = vector.broadcast %c15_i32 : i32 to vector<16x128xi32>
    %3 = arith.cmpi slt, %0, %2 : vector<16x128xi32>
    %c1_i32 = arith.constant 1 : i32
    %4 = vector.broadcast %c1_i32 : i32 to vector<16x128xi32>
    %5 = arith.cmpi sge, %0, %4 : vector<16x128xi32>
    %c15_i32_0 = arith.constant 15 : i32
    %6 = vector.broadcast %c15_i32_0 : i32 to vector<16x128xi32>
    %7 = arith.cmpi slt, %1, %6 : vector<16x128xi32>
    %c1_i32_1 = arith.constant 1 : i32
    %8 = vector.broadcast %c1_i32_1 : i32 to vector<16x128xi32>
    %9 = arith.cmpi sge, %1, %8 : vector<16x128xi32>
    %c0 = arith.constant 0 : index
    %c0_2 = arith.constant 0 : index
    %c0_3 = arith.constant 0 : index
    %c0_4 = arith.constant 0 : index
    %10 = vector.load %arg2[%c0, %c0_2, %c0_3, %c0_4] : memref<1x4x16x128xf32, #tpu.memory_space<vmem>>, vector<1x1x16x128xf32>
    %11 = vector.shape_cast %10 : vector<1x1x16x128xf32> to vector<16x128xf32>
    %c0_5 = arith.constant 0 : index
    %c1 = arith.constant 1 : index
    %c0_6 = arith.constant 0 : index
    %c0_7 = arith.constant 0 : index
    %12 = vector.load %arg2[%c0_5, %c1, %c0_6, %c0_7] : memref<1x4x16x128xf32, #tpu.memory_space<vmem>>, vector<1x1x16x128xf32>
    %13 = vector.shape_cast %12 : vector<1x1x16x128xf32> to vector<16x128xf32>
    %14 = arith.addf %11, %13 : vector<16x128xf32>
    %c0_8 = arith.constant 0 : index
    %c2 = arith.constant 2 : index
    %c0_9 = arith.constant 0 : index
    %c0_10 = arith.constant 0 : index
    %15 = vector.load %arg2[%c0_8, %c2, %c0_9, %c0_10] : memref<1x4x16x128xf32, #tpu.memory_space<vmem>>, vector<1x1x16x128xf32>
    %16 = vector.shape_cast %15 : vector<1x1x16x128xf32> to vector<16x128xf32>
    %17 = arith.addf %14, %16 : vector<16x128xf32>
    %c0_11 = arith.constant 0 : index
    %c3 = arith.constant 3 : index
    %c0_12 = arith.constant 0 : index
    %c0_13 = arith.constant 0 : index
    %18 = vector.load %arg2[%c0_11, %c3, %c0_12, %c0_13] : memref<1x4x16x128xf32, #tpu.memory_space<vmem>>, vector<1x1x16x128xf32>
    %19 = vector.shape_cast %18 : vector<1x1x16x128xf32> to vector<16x128xf32>
    %20 = arith.addf %17, %19 : vector<16x128xf32>
    %c1_i32_14 = arith.constant 1 : i32
    %21 = tpu.dynamic_rotate %20 by %c1_i32_14 dim 1 : vector<16x128xf32>, i32 -> vector<16x128xf32>
    %cst = arith.constant 0.000000e+00 : f32
    %22 = vector.broadcast %cst : f32 to vector<16x128xf32>
    %23 = arith.select %9, %21, %22 : vector<16x128xi1>, vector<16x128xf32>
    %c127_i32 = arith.constant 127 : i32
    %24 = tpu.dynamic_rotate %20 by %c127_i32 dim 1 : vector<16x128xf32>, i32 -> vector<16x128xf32>
    %cst_15 = arith.constant 0.000000e+00 : f32
    %25 = vector.broadcast %cst_15 : f32 to vector<16x128xf32>
    %26 = arith.select %7, %24, %25 : vector<16x128xi1>, vector<16x128xf32>
    %27 = arith.addf %23, %26 : vector<16x128xf32>
    %cst_16 = arith.constant 0.274068624 : f32
    %28 = vector.broadcast %cst_16 : f32 to vector<16x128xf32>
    %29 = arith.mulf %28, %27 : vector<16x128xf32>
    %cst_17 = arith.constant 0.451862752 : f32
    %30 = vector.broadcast %cst_17 : f32 to vector<16x128xf32>
    %31 = arith.mulf %30, %20 : vector<16x128xf32>
    %32 = arith.addf %29, %31 : vector<16x128xf32>
    %c1_i32_18 = arith.constant 1 : i32
    %33 = tpu.dynamic_rotate %32 by %c1_i32_18 dim 0 : vector<16x128xf32>, i32 -> vector<16x128xf32>
    %cst_19 = arith.constant 0.000000e+00 : f32
    %34 = vector.broadcast %cst_19 : f32 to vector<16x128xf32>
    %35 = arith.select %5, %33, %34 : vector<16x128xi1>, vector<16x128xf32>
    %c15_i32_20 = arith.constant 15 : i32
    %36 = tpu.dynamic_rotate %32 by %c15_i32_20 dim 0 : vector<16x128xf32>, i32 -> vector<16x128xf32>
    %cst_21 = arith.constant 0.000000e+00 : f32
    %37 = vector.broadcast %cst_21 : f32 to vector<16x128xf32>
    %38 = arith.select %3, %36, %37 : vector<16x128xi1>, vector<16x128xf32>
    %39 = arith.addf %35, %38 : vector<16x128xf32>
    %cst_22 = arith.constant 0.274068624 : f32
    %40 = vector.broadcast %cst_22 : f32 to vector<16x128xf32>
    %41 = arith.mulf %40, %39 : vector<16x128xf32>
    %cst_23 = arith.constant 0.451862752 : f32
    %42 = vector.broadcast %cst_23 : f32 to vector<16x128xf32>
    %43 = arith.mulf %42, %32 : vector<16x128xf32>
    %44 = arith.addf %41, %43 : vector<16x128xf32>
    %c1_i32_24 = arith.constant 1 : i32
    %45 = tpu.dynamic_rotate %44 by %c1_i32_24 dim 0 : vector<16x128xf32>, i32 -> vector<16x128xf32>
    %cst_25 = arith.constant 0.000000e+00 : f32
    %46 = vector.broadcast %cst_25 : f32 to vector<16x128xf32>
    %47 = arith.select %5, %45, %46 : vector<16x128xi1>, vector<16x128xf32>
    %c15_i32_26 = arith.constant 15 : i32
    %48 = tpu.dynamic_rotate %44 by %c15_i32_26 dim 0 : vector<16x128xf32>, i32 -> vector<16x128xf32>
    %cst_27 = arith.constant 0.000000e+00 : f32
    %49 = vector.broadcast %cst_27 : f32 to vector<16x128xf32>
    %50 = arith.select %3, %48, %49 : vector<16x128xi1>, vector<16x128xf32>
    %51 = arith.addf %47, %50 : vector<16x128xf32>
    %cst_28 = arith.constant 5.000000e-01 : f32
    %52 = vector.broadcast %cst_28 : f32 to vector<16x128xf32>
    %53 = arith.mulf %52, %51 : vector<16x128xf32>
    %54 = arith.addf %53, %44 : vector<16x128xf32>
    %55 = arith.subf %50, %47 : vector<16x128xf32>
    %c127_i32_29 = arith.constant 127 : i32
    %56 = tpu.dynamic_rotate %54 by %c127_i32_29 dim 1 : vector<16x128xf32>, i32 -> vector<16x128xf32>
    %cst_30 = arith.constant 0.000000e+00 : f32
    %57 = vector.broadcast %cst_30 : f32 to vector<16x128xf32>
    %58 = arith.select %7, %56, %57 : vector<16x128xi1>, vector<16x128xf32>
    %c1_i32_31 = arith.constant 1 : i32
    %59 = tpu.dynamic_rotate %54 by %c1_i32_31 dim 1 : vector<16x128xf32>, i32 -> vector<16x128xf32>
    %cst_32 = arith.constant 0.000000e+00 : f32
    %60 = vector.broadcast %cst_32 : f32 to vector<16x128xf32>
    %61 = arith.select %9, %59, %60 : vector<16x128xi1>, vector<16x128xf32>
    %62 = arith.subf %58, %61 : vector<16x128xf32>
    %cst_33 = arith.constant 2.500000e-01 : f32
    %63 = vector.broadcast %cst_33 : f32 to vector<16x128xf32>
    %64 = arith.mulf %62, %63 : vector<16x128xf32>
    %c1_i32_34 = arith.constant 1 : i32
    %65 = tpu.dynamic_rotate %55 by %c1_i32_34 dim 1 : vector<16x128xf32>, i32 -> vector<16x128xf32>
    %cst_35 = arith.constant 0.000000e+00 : f32
    %66 = vector.broadcast %cst_35 : f32 to vector<16x128xf32>
    %67 = arith.select %9, %65, %66 : vector<16x128xi1>, vector<16x128xf32>
    %c127_i32_36 = arith.constant 127 : i32
    %68 = tpu.dynamic_rotate %55 by %c127_i32_36 dim 1 : vector<16x128xf32>, i32 -> vector<16x128xf32>
    %cst_37 = arith.constant 0.000000e+00 : f32
    %69 = vector.broadcast %cst_37 : f32 to vector<16x128xf32>
    %70 = arith.select %7, %68, %69 : vector<16x128xi1>, vector<16x128xf32>
    %71 = arith.addf %67, %70 : vector<16x128xf32>
    %cst_38 = arith.constant 5.000000e-01 : f32
    %72 = vector.broadcast %cst_38 : f32 to vector<16x128xf32>
    %73 = arith.mulf %72, %71 : vector<16x128xf32>
    %74 = arith.addf %73, %55 : vector<16x128xf32>
    %cst_39 = arith.constant 2.500000e-01 : f32
    %75 = vector.broadcast %cst_39 : f32 to vector<16x128xf32>
    %76 = arith.mulf %74, %75 : vector<16x128xf32>
    %77 = arith.mulf %64, %64 : vector<16x128xf32>
    %78 = arith.mulf %76, %76 : vector<16x128xf32>
    %79 = arith.addf %77, %78 : vector<16x128xf32>
    %80 = math.sqrt %79 : vector<16x128xf32>
    %81 = arith.divf %76, %64 : vector<16x128xf32>
    %cst_40 = arith.constant 0.000000e+00 : f32
    %82 = vector.broadcast %cst_40 : f32 to vector<16x128xf32>
    %cst_41 = arith.constant -5.02733946 : f32
    %83 = vector.broadcast %cst_41 : f32 to vector<16x128xf32>
    %84 = arith.cmpf ogt, %81, %83 : vector<16x128xf32>
    %85 = arith.extui %84 : vector<16x128xi1> to vector<16x128xi32>
    %86 = arith.sitofp %85 : vector<16x128xi32> to vector<16x128xf32>
    %87 = arith.addf %82, %86 : vector<16x128xf32>
    %cst_42 = arith.constant -1.49660575 : f32
    %88 = vector.broadcast %cst_42 : f32 to vector<16x128xf32>
    %89 = arith.cmpf ogt, %81, %88 : vector<16x128xf32>
    %90 = arith.extui %89 : vector<16x128xi1> to vector<16x128xi32>
    %91 = arith.sitofp %90 : vector<16x128xi32> to vector<16x128xf32>
    %92 = arith.addf %87, %91 : vector<16x128xf32>
    %cst_43 = arith.constant -0.668178617 : f32
    %93 = vector.broadcast %cst_43 : f32 to vector<16x128xf32>
    %94 = arith.cmpf ogt, %81, %93 : vector<16x128xf32>
    %95 = arith.extui %94 : vector<16x128xi1> to vector<16x128xi32>
    %96 = arith.sitofp %95 : vector<16x128xi32> to vector<16x128xf32>
    %97 = arith.addf %92, %96 : vector<16x128xf32>
    %cst_44 = arith.constant -0.198912367 : f32
    %98 = vector.broadcast %cst_44 : f32 to vector<16x128xf32>
    %99 = arith.cmpf ogt, %81, %98 : vector<16x128xf32>
    %100 = arith.extui %99 : vector<16x128xi1> to vector<16x128xi32>
    %101 = arith.sitofp %100 : vector<16x128xi32> to vector<16x128xf32>
    %102 = arith.addf %97, %101 : vector<16x128xf32>
    %cst_45 = arith.constant 0.198912367 : f32
    %103 = vector.broadcast %cst_45 : f32 to vector<16x128xf32>
    %104 = arith.cmpf ogt, %81, %103 : vector<16x128xf32>
    %105 = arith.extui %104 : vector<16x128xi1> to vector<16x128xi32>
    %106 = arith.sitofp %105 : vector<16x128xi32> to vector<16x128xf32>
    %107 = arith.addf %102, %106 : vector<16x128xf32>
    %cst_46 = arith.constant 0.668178617 : f32
    %108 = vector.broadcast %cst_46 : f32 to vector<16x128xf32>
    %109 = arith.cmpf ogt, %81, %108 : vector<16x128xf32>
    %110 = arith.extui %109 : vector<16x128xi1> to vector<16x128xi32>
    %111 = arith.sitofp %110 : vector<16x128xi32> to vector<16x128xf32>
    %112 = arith.addf %107, %111 : vector<16x128xf32>
    %cst_47 = arith.constant 1.49660575 : f32
    %113 = vector.broadcast %cst_47 : f32 to vector<16x128xf32>
    %114 = arith.cmpf ogt, %81, %113 : vector<16x128xf32>
    %115 = arith.extui %114 : vector<16x128xi1> to vector<16x128xi32>
    %116 = arith.sitofp %115 : vector<16x128xi32> to vector<16x128xf32>
    %117 = arith.addf %112, %116 : vector<16x128xf32>
    %cst_48 = arith.constant 5.02733946 : f32
    %118 = vector.broadcast %cst_48 : f32 to vector<16x128xf32>
    %119 = arith.cmpf ogt, %81, %118 : vector<16x128xf32>
    %120 = arith.extui %119 : vector<16x128xi1> to vector<16x128xi32>
    %121 = arith.sitofp %120 : vector<16x128xi32> to vector<16x128xf32>
    %122 = arith.addf %117, %121 : vector<16x128xf32>
    %cst_49 = arith.constant 8.000000e+00 : f32
    %123 = vector.broadcast %cst_49 : f32 to vector<16x128xf32>
    %124 = arith.cmpf oge, %122, %123 : vector<16x128xf32>
    %cst_50 = arith.constant 8.000000e+00 : f32
    %125 = vector.broadcast %cst_50 : f32 to vector<16x128xf32>
    %126 = arith.subf %122, %125 : vector<16x128xf32>
    %127 = arith.select %124, %126, %122 : vector<16x128xi1>, vector<16x128xf32>
    %128 = arith.cmpf one, %81, %81 : vector<16x128xf32>
    %cst_51 = arith.constant 0x7FC00000 : f32
    %129 = vector.broadcast %cst_51 : f32 to vector<16x128xf32>
    %130 = arith.select %128, %129, %127 : vector<16x128xi1>, vector<16x128xf32>
    %c1_i32_52 = arith.constant 1 : i32
    %131 = tpu.dynamic_rotate %80 by %c1_i32_52 dim 0 : vector<16x128xf32>, i32 -> vector<16x128xf32>
    %cst_53 = arith.constant 0.000000e+00 : f32
    %132 = vector.broadcast %cst_53 : f32 to vector<16x128xf32>
    %133 = arith.select %5, %131, %132 : vector<16x128xi1>, vector<16x128xf32>
    %c15_i32_54 = arith.constant 15 : i32
    %134 = tpu.dynamic_rotate %80 by %c15_i32_54 dim 0 : vector<16x128xf32>, i32 -> vector<16x128xf32>
    %cst_55 = arith.constant 0.000000e+00 : f32
    %135 = vector.broadcast %cst_55 : f32 to vector<16x128xf32>
    %136 = arith.select %3, %134, %135 : vector<16x128xi1>, vector<16x128xf32>
    %c127_i32_56 = arith.constant 127 : i32
    %137 = tpu.dynamic_rotate %80 by %c127_i32_56 dim 1 : vector<16x128xf32>, i32 -> vector<16x128xf32>
    %cst_57 = arith.constant 0.000000e+00 : f32
    %138 = vector.broadcast %cst_57 : f32 to vector<16x128xf32>
    %139 = arith.select %7, %137, %138 : vector<16x128xi1>, vector<16x128xf32>
    %c1_i32_58 = arith.constant 1 : i32
    %140 = tpu.dynamic_rotate %80 by %c1_i32_58 dim 1 : vector<16x128xf32>, i32 -> vector<16x128xf32>
    %cst_59 = arith.constant 0.000000e+00 : f32
    %141 = vector.broadcast %cst_59 : f32 to vector<16x128xf32>
    %142 = arith.select %9, %140, %141 : vector<16x128xi1>, vector<16x128xf32>
    %c127_i32_60 = arith.constant 127 : i32
    %143 = tpu.dynamic_rotate %133 by %c127_i32_60 dim 1 : vector<16x128xf32>, i32 -> vector<16x128xf32>
    %cst_61 = arith.constant 0.000000e+00 : f32
    %144 = vector.broadcast %cst_61 : f32 to vector<16x128xf32>
    %145 = arith.select %7, %143, %144 : vector<16x128xi1>, vector<16x128xf32>
    %c1_i32_62 = arith.constant 1 : i32
    %146 = tpu.dynamic_rotate %133 by %c1_i32_62 dim 1 : vector<16x128xf32>, i32 -> vector<16x128xf32>
    %cst_63 = arith.constant 0.000000e+00 : f32
    %147 = vector.broadcast %cst_63 : f32 to vector<16x128xf32>
    %148 = arith.select %9, %146, %147 : vector<16x128xi1>, vector<16x128xf32>
    %c127_i32_64 = arith.constant 127 : i32
    %149 = tpu.dynamic_rotate %136 by %c127_i32_64 dim 1 : vector<16x128xf32>, i32 -> vector<16x128xf32>
    %cst_65 = arith.constant 0.000000e+00 : f32
    %150 = vector.broadcast %cst_65 : f32 to vector<16x128xf32>
    %151 = arith.select %7, %149, %150 : vector<16x128xi1>, vector<16x128xf32>
    %c1_i32_66 = arith.constant 1 : i32
    %152 = tpu.dynamic_rotate %136 by %c1_i32_66 dim 1 : vector<16x128xf32>, i32 -> vector<16x128xf32>
    %cst_67 = arith.constant 0.000000e+00 : f32
    %153 = vector.broadcast %cst_67 : f32 to vector<16x128xf32>
    %154 = arith.select %9, %152, %153 : vector<16x128xi1>, vector<16x128xf32>
    %cst_68 = arith.constant 0.000000e+00 : f32
    %155 = vector.broadcast %cst_68 : f32 to vector<16x128xf32>
    %156 = arith.cmpf oeq, %130, %155 : vector<16x128xf32>
    %cst_69 = arith.constant 4.000000e+00 : f32
    %157 = vector.broadcast %cst_69 : f32 to vector<16x128xf32>
    %158 = arith.cmpf oeq, %130, %157 : vector<16x128xf32>
    %159 = arith.ori %156, %158 : vector<16x128xi1>
    %160 = arith.cmpf ogt, %80, %139 : vector<16x128xf32>
    %161 = arith.cmpf ogt, %80, %142 : vector<16x128xf32>
    %162 = arith.andi %160, %161 : vector<16x128xi1>
    %cst_70 = arith.constant dense<true> : vector<16x128xi1>
    %163 = arith.xori %162, %cst_70 : vector<16x128xi1>
    %164 = arith.andi %163, %159 : vector<16x128xi1>
    %cst_71 = arith.constant 0.000000e+00 : f32
    %165 = vector.broadcast %cst_71 : f32 to vector<16x128xf32>
    %166 = arith.select %164, %165, %80 : vector<16x128xi1>, vector<16x128xf32>
    %cst_72 = arith.constant 1.000000e+00 : f32
    %167 = vector.broadcast %cst_72 : f32 to vector<16x128xf32>
    %168 = arith.cmpf oeq, %130, %167 : vector<16x128xf32>
    %cst_73 = arith.constant 5.000000e+00 : f32
    %169 = vector.broadcast %cst_73 : f32 to vector<16x128xf32>
    %170 = arith.cmpf oeq, %130, %169 : vector<16x128xf32>
    %171 = arith.ori %168, %170 : vector<16x128xi1>
    %172 = arith.cmpf ogt, %80, %145 : vector<16x128xf32>
    %173 = arith.cmpf ogt, %80, %154 : vector<16x128xf32>
    %174 = arith.andi %172, %173 : vector<16x128xi1>
    %cst_74 = arith.constant dense<true> : vector<16x128xi1>
    %175 = arith.xori %174, %cst_74 : vector<16x128xi1>
    %176 = arith.andi %175, %171 : vector<16x128xi1>
    %cst_75 = arith.constant 0.000000e+00 : f32
    %177 = vector.broadcast %cst_75 : f32 to vector<16x128xf32>
    %178 = arith.select %176, %177, %166 : vector<16x128xi1>, vector<16x128xf32>
    %cst_76 = arith.constant 2.000000e+00 : f32
    %179 = vector.broadcast %cst_76 : f32 to vector<16x128xf32>
    %180 = arith.cmpf oeq, %130, %179 : vector<16x128xf32>
    %cst_77 = arith.constant 6.000000e+00 : f32
    %181 = vector.broadcast %cst_77 : f32 to vector<16x128xf32>
    %182 = arith.cmpf oeq, %130, %181 : vector<16x128xf32>
    %183 = arith.ori %180, %182 : vector<16x128xi1>
    %184 = arith.cmpf ogt, %80, %133 : vector<16x128xf32>
    %185 = arith.cmpf ogt, %80, %136 : vector<16x128xf32>
    %186 = arith.andi %184, %185 : vector<16x128xi1>
    %cst_78 = arith.constant dense<true> : vector<16x128xi1>
    %187 = arith.xori %186, %cst_78 : vector<16x128xi1>
    %188 = arith.andi %187, %183 : vector<16x128xi1>
    %cst_79 = arith.constant 0.000000e+00 : f32
    %189 = vector.broadcast %cst_79 : f32 to vector<16x128xf32>
    %190 = arith.select %188, %189, %178 : vector<16x128xi1>, vector<16x128xf32>
    %cst_80 = arith.constant 3.000000e+00 : f32
    %191 = vector.broadcast %cst_80 : f32 to vector<16x128xf32>
    %192 = arith.cmpf oeq, %130, %191 : vector<16x128xf32>
    %cst_81 = arith.constant 7.000000e+00 : f32
    %193 = vector.broadcast %cst_81 : f32 to vector<16x128xf32>
    %194 = arith.cmpf oeq, %130, %193 : vector<16x128xf32>
    %195 = arith.ori %192, %194 : vector<16x128xi1>
    %196 = arith.cmpf ogt, %80, %148 : vector<16x128xf32>
    %197 = arith.cmpf ogt, %80, %151 : vector<16x128xf32>
    %198 = arith.andi %196, %197 : vector<16x128xi1>
    %cst_82 = arith.constant dense<true> : vector<16x128xi1>
    %199 = arith.xori %198, %cst_82 : vector<16x128xi1>
    %200 = arith.andi %199, %195 : vector<16x128xi1>
    %cst_83 = arith.constant 0.000000e+00 : f32
    %201 = vector.broadcast %cst_83 : f32 to vector<16x128xf32>
    %202 = arith.select %200, %201, %190 : vector<16x128xi1>, vector<16x128xf32>
    %c0_84 = arith.constant 0 : index
    %c0_85 = arith.constant 0 : index
    %c0_86 = arith.constant 0 : index
    %c0_87 = arith.constant 0 : index
    %203 = vector.load %arg3[%c0_84, %c0_85, %c0_86, %c0_87] : memref<1x1x16x128xf32, #tpu.memory_space<vmem>>, vector<1x1x16x128xf32>
    %204 = vector.shape_cast %203 : vector<1x1x16x128xf32> to vector<16x128xf32>
    %205 = vector.shape_cast %202 : vector<16x128xf32> to vector<1x1x16x128xf32>
    tpu.vector_store %arg3[%c0_84, %c0_85, %c0_86, %c0_87], %205 {strides = array<i32>} : memref<1x1x16x128xf32, #tpu.memory_space<vmem>>, vector<1x1x16x128xf32>,
    return
  }
  func.func @transform_0(%arg0: i32, %arg1: i32) -> (i32, i32, i32, i32) {
    %c0_i32 = arith.constant 0 : i32
    %c0_i32_0 = arith.constant 0 : i32
    %c0_i32_1 = arith.constant 0 : i32
    %c0_i32_2 = arith.constant 0 : i32
    return %arg0, %c0_i32, %c0_i32_0, %c0_i32_1 : i32, i32, i32, i32
  }
  func.func @transform_1(%arg0: i32, %arg1: i32) -> (i32, i32, i32, i32) {
    %c0_i32 = arith.constant 0 : i32
    %c0_i32_0 = arith.constant 0 : i32
    %c0_i32_1 = arith.constant 0 : i32
    return %arg0, %c0_i32, %arg1, %c0_i32_0 : i32, i32, i32, i32
  }
}

</mosaic_0001>

<bundles_post_ra>
// kernel: tpu_custom_call.1
= control target key start
LH: loop header
LB: loop body
LE: loop exit
PB: predicated region body
PF: predicated region fallthrough
CT: control target
= control target key end

     0   :  { %6 = vsyncpa [#allocation3], 0  ;;  %s1360_s0 = inlined_call_operand.hbm [shape: f32[2,4,16,128], index: 0, kind: input, shape index: {}]   ;;  %s1361_s1 = inlined_call_operand.hbm [shape: f32[2,1,16,128], index: 1, kind: output, shape index: {}]  }
   0x1   :  { %8 = vsyncpa [#allocation3 + $0x1], 0 }
   0x2   :  { %9 = vsyncpa [#allocation4], 0 }
   0x3   :  { %11 = vsyncpa [#allocation4 + $0x1], 0  ;;  %s887_s6 = smov 0   ;;  %s889_s7 = smov 0  }
   0x4   :  { %s891_s8 = smov 0   ;;  %s893_s9 = smov 0  }
   0x5   :  { %s895_s10 = smov 0   ;;  %s897_s11 = smov 0  }
   0x6 LB: > { %s636_s12 = sadd.s32 4294967295, %s867_s11   ;;  %s637_s13 = sadd.s32 4294967294, %s867_s11   ;;  %s867_s11 = sphi %s897_s11, %s17_s11   ;;  %s863_s10 = sphi %s895_s10, %s1424_s10   ;;  %s859_s9 = sphi %s893_s9, %s1423_s9   ;;  %s855_s8 = sphi %s891_s8, %s1422_s8   ;;  %s851_s7 = sphi %s889_s7, %s1421_s7   ;;  %s847_s6 = sphi %s887_s6, %s1420_s6  }
   0x7   : > { %s29_s14 = sadd.s32 1, %s863_s10  ;;  %s36_s15 = sadd.s32 1, %s855_s8 }
   0x8   : > { %p31_p0 = scmp.ge.s32.totalorder %s29_s14, 2  ;;  %p43_p1 = scmp.ne.s32.totalorder %s855_s8, %s851_s7 }
   0x9   : > { %p44_p2 = scmp.eq.s32.totalorder %s867_s11, 0  ;;  %p49_p3 = scmp.ne.s32.totalorder %s851_s7, %s847_s6 }
   0xa   : > { %s1426_s14 = smov (%p31_p0, %s29_s14), 0  ;;  %p50_p5 = scmp.eq.s32.totalorder %s636_s12, 0 }
   0xb   : > { %p928_p4 = por %p44_p2, %p43_p1  ;;  %s33_s17 = ssub.s32 %s863_s10, %s1426_s14 }
   0xc   : > { %p75_p6 = scmp.eq.s32.totalorder %s636_s12, 1  ;;  %p34_p7 = scmp.eq.s32.totalorder %s33_s17, 0 }
   0xd   : > { %p934_p8 = por %p50_p5, %p49_p3  ;;  %p81_p10 = scmp.eq.s32.totalorder %s637_s13, 1 }
   0xe   : > { %p938_p9 = por %p75_p6, %p43_p1  ;;  %p639_p12 = scmp.ge.s32.totalorder %s867_s11, 2 }
   0xf   : > { %s943_s20 = scalar_select %p34_p7, %s855_s8, %s36_s15  }
  0x10   : > { %p945_p11 = por %p81_p10, %p49_p3  ;;  %p689_p13 = scmp.lt.s32.totalorder %s867_s11, 2 }
  0x11   : > { %s101_s22 = sand.u32 1, %s855_s8   ;;  %s675_s24 = sshll.u32 %s863_s10, 6 }
  0x12   : > { %s640_s23 = sshll.u32 %s101_s22, 6  ;;  %s110_s27 = scalar_lea.hbm %s1360_s0, %s675_s24 }
  0x13   : > { %s105_s28 = scalar_lea.vmem [#allocation2], %s640_s23  ;;  %s111_s30 = sshll.u32 %s110_s27, 4  ;;  %s112_s30 = int_to_ptr.hbm [resolvable:$true] %s111_s30 }
  0x14   : > { %s113_s29 = sshll.u32 %s105_s28, 4  ;;  %p682_p0 = pnand %p689_p13, %p928_p4  ;;  %s114_s29 = int_to_ptr.vmem [resolvable:$true] %s113_s29 }
  0x15   : > { %p643_p1 = scmp.ge.s32.totalorder %s867_s11, 1  ;;  %s102_s2 = scalar_lea.sflag [#allocation3], %s101_s22 }
  0x16   : > { %s869_s3 = smov 128   ;;  %s870_s4 = smov 8  }
  0x17   : > { %684 = dma.hbm_to_vmem [thread:$0]  (!%p682_p0), %s112_s30, 1024, %s114_s29, %s102_s2, %s869_s3, %s869_s3, %s870_s4  }
  0x18   : > { %p121_p2 = scmp.lt.s32.totalorder %s867_s11, 3 }
  0x1a   : > { %p122_p3 = pnand %p643_p1, %p121_p2 }
  0x1b   : > { %s961_s5 = sand.u32 (!%p122_p3), 1, %s851_s7  }
  0x1c   : > { %125 = sbr.rel (%p122_p3) target bundleno = 496 (0x1f0), region = 24  ;;  %s644_s12 = sshll.u32 (!%p122_p3), %s961_s5, 6 }
  0x1d   : > { %s128_s13 = scalar_lea.sflag (!%p122_p3), [#allocation3], %s961_s5  ;;  %s131_s15 = scalar_lea.vmem (!%p122_p3), [#allocation2], %s644_s12 }
  0x21   : > { %838 = dma.done.wait (%p934_p8), %s128_s13, 1024  }
  0x22   : > { %840 = vsyncadd (%p934_p8), %s128_s13, 4294966272  ;;  %v163_v0 = vld [vmem:[%s131_s15] sm:$0xff]  ;;  %v646_v1 = vld [vmem:[%s131_s15 + $0x10] sm:$0xff]  ;;  %s871_s16 = smov 127   ;;  %s872_s17 = smov 1   ;;  %v152_v14 = vlaneseq }
  0x23   : > { %v648_v2 = vld [vmem:[%s131_s15 + $0x20] sm:$0xff]  ;;  %v168_v3 = vadd.f32 %v646_v1, %v163_v0  ;;  %v164_v4 = vld [vmem:[%s131_s15 + $0x8] sm:$0xff]  ;;  %v647_v5 = vld [vmem:[%s131_s15 + $0x18] sm:$0xff]  ;;  %s645_s18 = sshll.u32 %s961_s5, 4  ;;  %s676_s22 = sshll.u32 %s859_s9, 4 }
  0x24   : > { %v650_v6 = vld [vmem:[%s131_s15 + $0x30] sm:$0xff]  ;;  %v169_v8 = vadd.f32 %v647_v5, %v164_v4  ;;  %v649_v9 = vld [vmem:[%s131_s15 + $0x28] sm:$0xff]  ;;  %v651_v12 = vld [vmem:[%s131_s15 + $0x38] sm:$0xff]  ;;  %v973_v15 = vand.u32 127, %v152_v14  ;;  %v981_v21 = vshrl.u32 %v152_v14, 7  ;;  %s548_s24 = scalar_lea.hbm %s1361_s1, %s676_s22  ;;  %s150_s25 = scalar_lea.vmem [#allocation5], %s645_s18 }
  0x25   : > { %v173_v7 = vadd.f32 %v648_v2, %v168_v3  ;;  %s549_s26 = sshll.u32 %s150_s25, 4  ;;  %s551_s27 = sshll.u32 %s548_s24, 4  ;;  %s550_s26 = int_to_ptr.vmem [resolvable:$true] %s549_s26  ;;  %s552_s27 = int_to_ptr.hbm [resolvable:$true] %s551_s27 }
  0x26   : > { %v174_v11 = vadd.f32 %v649_v9, %v169_v8  ;;  %vm1363_vm0 = vcmp.lt.s32.totalorder %v973_v15, 15  ;;  %vm1362_vm1 = vcmp.ge.s32.totalorder %v973_v15, 1  ;;  %v988_v30 = vadd.s32 8, %v981_v21  ;;  %s535_s28 = scalar_lea.sflag [#allocation4], %s961_s5  ;;  %s799_s29 = sshra.s32 %s552_s27, 4  ;;  %s800_s29 = int_to_ptr.hbm [resolvable:$true] %s799_s29 }
  0x27   : > { %v178_v10 = vadd.f32 %v650_v6, %v173_v7  ;;  %vm202_vm3 = vcmp.lt.s32.totalorder %v981_v21, 1  ;;  %vm209_vm4 = vcmp.lt.s32.totalorder %v981_v21, 7  ;;  %vm159_vm5 = vcmp.ge.s32.totalorder %v981_v21, 1  ;;  %s801_s30 = scalar_lea.hbm %s800_s29, 16  ;;  %s805_s4 = scalar_lea.hbm %s1361_s1, 32 }
  0x28   : > { %v179_v13 = vadd.f32 %v651_v12, %v174_v11  ;;  %vm158_vm2 = vcmp.lt.s32.totalorder %v988_v30, 15  ;;  %p802_p4 = scmp.ne.s32.totalorder %s800_s29, %s801_s30  ;;  %p806_p7 = scmp.lt.s32.totalorder %s800_s29, %s1361_s1 }
  0x29   : > { %186 = vrot.lane.b32.xlu1 %v178_v10, %s871_s16  ;;  %180 = vrot.lane.b32.xlu0 %v178_v10, %s872_s17  ;;  %v196_v23 = vmul.f32 0.45186275, %v178_v10  ;;  %p807_p8 = scmp.lt.s32.totalorder %s805_s4, %s801_s30 }
  0x2a   : > { %v197_v28 = vmul.f32 0.45186275, %v179_v13  ;;  %p803_p5 = pnand %p802_p4, %p938_p9 }
  0x2b   : > { %p808_p10 = por %p807_p8, %p806_p7 }
  0x2c   : > { %p804_p6 = pneg %p803_p5 }
  0x2e   : > { %p809_p13 = pnand %p808_p10, %p804_p6 }
  0x31   : > { %188 = vrot.lane.b32.xlu1 %v179_v13, %s871_s16  ;;  %182 = vrot.lane.b32.xlu0 %v179_v13, %s872_s17 }
  0x9b   : > { %v187_v16 = vpop.permute.xlu1 %186  ;;  %v181_v17 = vpop.permute.xlu0 %180 }
  0x9c   : > { %v190_v18 = vsel %vm1363_vm0, %v187_v16, 0.0  ;;  %v184_v19 = vsel %vm1362_vm1, %v181_v17, 0.0 }
  0x9d   : > { %v192_v20 = vadd.f32 %v190_v18, %v184_v19 }
  0x9f   : > { %v194_v22 = vmul.f32 0.27406862, %v192_v20 }
  0xa1   : > { %v198_v31 = vadd.f32 %v196_v23, %v194_v22 }
  0xa3   : > { %v189_v24 = vpop.permute.xlu1 %188  ;;  %v183_v25 = vpop.permute.xlu0 %182  ;;  %v200_v34 = vrot.slane %v198_v31, 7  ;;  %v207_v35 = vrot.slane %v198_v31, 1  ;;  %v218_v46 = vmul.f32 0.45186275, %v198_v31 }
  0xa4   : > { %v191_v26 = vsel %vm1363_vm0, %v189_v24, 0.0  ;;  %v185_v27 = vsel %vm1362_vm1, %v183_v25, 0.0 }
  0xa5   : > { %v193_v29 = vadd.f32 %v191_v26, %v185_v27 }
  0xa7   : > { %v195_v32 = vmul.f32 0.27406862, %v193_v29 }
  0xa9   : > { %v199_v33 = vadd.f32 %v197_v28, %v195_v32 }
  0xab   : > { %v201_v36 = vrot.slane %v199_v33, 7  ;;  %v208_v37 = vrot.slane %v199_v33, 1  ;;  %v219_v48 = vmul.f32 0.45186275, %v199_v33 }
  0xad   : > { %v203_v38 = vsel %vm202_vm3, %v200_v34, %v201_v36  ;;  %v211_v39 = vsel %vm209_vm4, %v208_v37, %v207_v35  ;;  %v204_v40 = vsel %vm202_vm3, %v201_v36, %v200_v34  ;;  %v210_v41 = vsel %vm209_vm4, %v207_v35, %v208_v37 }
  0xae   : > { %v213_v42 = vsel %vm158_vm2, %v211_v39, 0.0  ;;  %v205_v43 = vsel %vm159_vm5, %v204_v40, 0.0 }
  0xaf   : > { %v215_v44 = vadd.f32 %v213_v42, %v203_v38  ;;  %v214_v45 = vadd.f32 %v210_v41, %v205_v43 }
  0xb1   : > { %v217_v47 = vmul.f32 0.27406862, %v215_v44  ;;  %v216_v49 = vmul.f32 0.27406862, %v214_v45 }
  0xb3   : > { %v221_v50 = vadd.f32 %v219_v48, %v217_v47  ;;  %v220_v51 = vadd.f32 %v218_v46, %v216_v49 }
  0xb5   : > { %v222_v52 = vrot.slane %v220_v51, 7  ;;  %v223_v53 = vrot.slane %v221_v50, 7  ;;  %v228_v54 = vrot.slane %v220_v51, 1  ;;  %v229_v55 = vrot.slane %v221_v50, 1 }
  0xb7   : > { %v225_v56 = vsel %vm202_vm3, %v223_v53, %v222_v52  ;;  %v230_v57 = vsel %vm209_vm4, %v228_v54, %v229_v55  ;;  %v224_v58 = vsel %vm202_vm3, %v222_v52, %v223_v53  ;;  %v231_v59 = vsel %vm209_vm4, %v229_v55, %v228_v54 }
  0xb8   : > { %v226_v60 = vsel %vm159_vm5, %v225_v56, 0.0  ;;  %v233_v61 = vsel %vm158_vm2, %v231_v59, 0.0 }
  0xb9   : > { %v240_v62 = vsub.f32 %v230_v57, %v226_v60  ;;  %v241_v63 = vsub.f32 %v233_v61, %v224_v58  ;;  %v235_v0 = vadd.f32 %v233_v61, %v224_v58  ;;  %v234_v1 = vadd.f32 %v230_v57, %v226_v60 }
  0xbb   : > { %264 = vrot.lane.b32.xlu0 %v240_v62, %s871_s16  ;;  %258 = vrot.lane.b32.xlu2 %v240_v62, %s872_s17  ;;  %v237_v2 = vmul.f32 0.5, %v235_v0  ;;  %v236_v3 = vmul.f32 0.5, %v234_v1 }
  0xbc   : > { %266 = vrot.lane.b32.xlu1 %v241_v63, %s871_s16 }
  0xbd   : > { %v239_v4 = vadd.f32 %v237_v2, %v221_v50  ;;  %v238_v5 = vadd.f32 %v236_v3, %v220_v51 }
  0xc3   : > { %260 = vrot.lane.b32.xlu2 %v241_v63, %s872_s17  ;;  %244 = vrot.lane.b32.xlu0 %v239_v4, %s871_s16 }
  0xc4   : > { %248 = vrot.lane.b32.xlu1 %v238_v5, %s872_s17 }
  0xcb   : > { %242 = vrot.lane.b32.xlu2 %v238_v5, %s871_s16 }
  0xd3   : > { %250 = vrot.lane.b32.xlu2 %v239_v4, %s872_s17 }
 0x115   : > { %v259_v6 = vpop.permute.xlu2 %258 }
 0x116   : > { %v262_v10 = vsel %vm1362_vm1, %v259_v6, 0.0 }
 0x11d   : > { %v261_v7 = vpop.permute.xlu2 %260 }
 0x11e   : > { %v263_v13 = vsel %vm1362_vm1, %v261_v7, 0.0 }
 0x125   : > { %v243_v8 = vpop.permute.xlu2 %242 }
 0x126   : > { %v246_v28 = vsel %vm1363_vm0, %v243_v8, 0.0 }
 0x12d   : > { %v265_v9 = vpop.permute.xlu0 %264  ;;  %v251_v20 = vpop.permute.xlu2 %250 }
 0x12e   : > { %v268_v11 = vsel %vm1363_vm0, %v265_v9, 0.0  ;;  %v267_v12 = vpop.permute.xlu1 %266  ;;  %v253_v25 = vsel %vm1362_vm1, %v251_v20, 0.0 }
 0x12f   : > { %v270_v14 = vadd.f32 %v268_v11, %v262_v10  ;;  %v269_v16 = vsel %vm1363_vm0, %v267_v12, 0.0 }
 0x130   : > { %v271_v17 = vadd.f32 %v269_v16, %v263_v13 }
 0x131   : > { %v272_v18 = vmul.f32 0.5, %v270_v14 }
 0x132   : > { %v273_v19 = vmul.f32 0.5, %v271_v17  ;;  %v873_v17 = vmov 0.0  }
 0x133   : > { %v274_v22 = vadd.f32 %v272_v18, %v240_v62 }
 0x134   : > { %v275_v23 = vadd.f32 %v273_v19, %v241_v63 }
 0x135   : > { %v245_v24 = vpop.permute.xlu0 %244  ;;  %v276_v33 = vmul.f32 0.25, %v274_v22 }
 0x136   : > { %v249_v26 = vpop.permute.xlu1 %248  ;;  %v247_v27 = vsel %vm1363_vm0, %v245_v24, 0.0  ;;  %v277_v29 = vmul.f32 0.25, %v275_v23 }
 0x137   : > { %v252_v31 = vsel %vm1362_vm1, %v249_v26, 0.0  ;;  %v255_v32 = vsub.f32 %v247_v27, %v253_v25  ;;  %v280_v39 = vmul.f32 %v276_v33, %v276_v33 }
 0x138   : > { %v254_v34 = vsub.f32 %v246_v28, %v252_v31  ;;  %v281_v37 = vmul.f32 %v277_v29, %v277_v29 }
 0x139   : > { %v257_v35 = vmul.f32 0.25, %v255_v32 }
 0x13a   : > { %v256_v36 = vmul.f32 0.25, %v254_v34 }
 0x13b   : > { %v279_v38 = vmul.f32 %v257_v35, %v257_v35  ;;  %747 = vrcp.f32 %v257_v35  ;;  %v332_v50 = vand.u32 2147483647, %v257_v35  ;;  %v334_v51 = vand.u32 2147483648, %v257_v35 }
 0x13c   : > { %v278_v40 = vmul.f32 %v256_v36, %v256_v36  ;;  %749 = vrcp.f32 %v256_v36  ;;  %v319_v53 = vand.u32 2147483648, %v256_v36  ;;  %v317_v58 = vand.u32 2147483647, %v256_v36 }
 0x13d   : > { %v1042_v41 = vadd.f32 %v281_v37, %v279_v38  ;;  %vm328_vm8 = vweird.f32 %v257_v35  ;;  %vm313_vm9 = vweird.f32 %v256_v36  ;;  %v335_v63 = vor.u32 1.1754944e-38, %v334_v51 }
 0x13e   : > { %v1044_v42 = vadd.f32 %v280_v39, %v278_v40  ;;  %v320_v0 = vor.u32 1.1754944e-38, %v319_v53  ;;  %vm333_vm12 = vcmp.eq.f32.partialorder %v332_v50, 8.507059e+37  ;;  %vm318_vm13 = vcmp.eq.f32.partialorder %v317_v58, 8.507059e+37 }
 0x13f   : > { %751 = vrsqrt.f32 %v1042_v41  ;;  %vm303_vm15 = vcmp.eq.f32.partialorder %v1042_v41, inf  ;;  %v306_v16 = vand.u32 2147483648, %v1042_v41 }
 0x140   : > { %753 = vrsqrt.f32 %v1044_v42  ;;  %vm291_vm14 = vcmp.eq.f32.partialorder %v1044_v42, inf  ;;  %v294_v12 = vand.u32 2147483648, %v1044_v42 }
 0x141   : > { %v748_v43 = vpop.eup %747 }
 0x142   : > { %v750_v44 = vpop.eup %749  ;;  %v324_v45 = vmul.f32 %v748_v43, %v257_v35  ;;  %vm329_vm6 = vweird.f32 %v748_v43 }
 0x143   : > { %v309_v46 = vmul.f32 %v750_v44, %v256_v36  ;;  %vm314_vm7 = vweird.f32 %v750_v44  ;;  %vm330_vm10 = vmor %vm328_vm8, %vm329_vm6  ;;  %vm293_vm6 = vcmp.eq.f32.partialorder %v1044_v42, 0.0 }
 0x144   : > { %v325_v47 = vsub.f32 1.0, %v324_v45  ;;  %vm315_vm11 = vmor %vm313_vm9, %vm314_vm7  ;;  %vm305_vm7 = vcmp.eq.f32.partialorder %v1042_v41, 0.0 }
 0x145   : > { %v752_v48 = vpop.eup %751  ;;  %v310_v49 = vsub.f32 1.0, %v309_v46 }
 0x146   : > { %v754_v52 = vpop.eup %753  ;;  %v297_v54 = vmul.f32 %v752_v48, %v1042_v41  ;;  %v326_v55 = vmul.f32 %v748_v43, %v325_v47 }
 0x147   : > { %v285_v56 = vmul.f32 %v754_v52, %v1044_v42  ;;  %v311_v57 = vmul.f32 %v750_v44, %v310_v49 }
 0x148   : > { %v298_v59 = vmul.f32 %v752_v48, %v297_v54  ;;  %v327_v60 = vadd.f32 %v748_v43, %v326_v55 }
 0x149   : > { %v286_v61 = vmul.f32 %v754_v52, %v285_v56  ;;  %v312_v62 = vadd.f32 %v750_v44, %v311_v57 }
 0x14a   : > { %v299_v1 = vmul.f32 0.5, %v298_v59  ;;  %v331_v2 = vsel %vm330_vm10, %v748_v43, %v327_v60 }
 0x14b   : > { %v287_v3 = vmul.f32 0.5, %v286_v61  ;;  %v316_v4 = vsel %vm315_vm11, %v750_v44, %v312_v62  ;;  %v336_v5 = vsel %vm333_vm12, %v335_v63, %v331_v2  ;;  %v1378_v2 = vmov 0 }
 0x14c   : > { %v321_v6 = vsel %vm318_vm13, %v320_v0, %v316_v4  ;;  %v300_v7 = vsub.f32 1.5, %v299_v1  ;;  %v1050_v8 = vmul.f32 %v336_v5, %v277_v29  ;;  %v1380_v4 = vmov 0 }
 0x14d   : > { %v288_v9 = vsub.f32 1.5, %v287_v3  ;;  %v1052_v10 = vmul.f32 %v321_v6, %v276_v33 }
 0x14e   : > { %v301_v11 = vmul.f32 %v752_v48, %v300_v7  ;;  %vm339_vm12 = vcmp.gt.f32.partialorder %v1050_v8, -5.0273395  ;;  %vm347_vm1 = vcmp.gt.f32.partialorder %v1050_v8, -1.4966058 }
 0x14f   : > { %v289_v13 = vmul.f32 %v754_v52, %v288_v9  ;;  %vm338_vm8 = vcmp.gt.f32.partialorder %v1052_v10, -5.0273395  ;;  %vm346_vm9 = vcmp.gt.f32.partialorder %v1052_v10, -1.4966058  ;;  %vm354_vm10 = vcmp.gt.f32.partialorder %v1052_v10, -0.6681786 }
 0x150   : > { %v302_v14 = vmul.f32 %v301_v11, %v1042_v41  ;;  %v652_v18 = vsel %vm338_vm8, 1.0, %v873_v17  ;;  %v654_v19 = vsel %vm346_vm9, 1.0, %v873_v17  ;;  %vm362_vm11 = vcmp.gt.f32.partialorder %v1052_v10, -0.19891237 }
 0x151   : > { %v290_v20 = vmul.f32 %v289_v13, %v1044_v42  ;;  %v352_v22 = vadd.f32 %v654_v19, %v652_v18  ;;  %v656_v24 = vsel %vm354_vm10, 1.0, %v873_v17  ;;  %vm370_vm13 = vcmp.gt.f32.partialorder %v1052_v10, 0.19891237 }
 0x152   : > { %v304_v23 = vsel %vm303_vm15, %v1042_v41, %v302_v14  ;;  %vm378_vm8 = vcmp.gt.f32.partialorder %v1052_v10, 0.6681786  ;;  %v658_v31 = vsel %vm362_vm11, 1.0, %v873_v17  ;;  %v660_v34 = vsel %vm370_vm13, 1.0, %v873_v17 }
 0x153   : > { %v292_v25 = vsel %vm291_vm14, %v1044_v42, %v290_v20  ;;  %v1080_v26 = vsel %vm305_vm7, %v306_v16, %v304_v23  ;;  %v360_v27 = vadd.f32 %v656_v24, %v352_v22  ;;  %vm355_vm14 = vcmp.gt.f32.partialorder %v1050_v8, -0.6681786 }
 0x154   : > { %v1085_v28 = vsel %vm293_vm6, %v294_v12, %v292_v25  ;;  %426 = vrot.lane.b32.xlu1 %v1080_v26, %s871_s16  ;;  %v413_v29 = vrot.slane %v1080_v26, 7  ;;  %vm386_vm15 = vcmp.gt.f32.partialorder %v1052_v10, 1.4966058  ;;  %v662_v35 = vsel %vm378_vm8, 1.0, %v873_v17 }
 0x155   : > { %430 = vrot.lane.b32.xlu2 %v1085_v28, %s872_s17  ;;  %424 = vrot.lane.b32.xlu0 %v1085_v28, %s871_s16  ;;  %v412_v32 = vrot.slane %v1085_v28, 7  ;;  %v368_v33 = vadd.f32 %v658_v31, %v360_v27  ;;  %v418_v36 = vrot.slane %v1085_v28, 1  ;;  %v419_v37 = vrot.slane %v1080_v26, 1 }
 0x156   : > { %v653_v38 = vsel %vm339_vm12, 1.0, %v873_v17  ;;  %vm394_vm6 = vcmp.gt.f32.partialorder %v1052_v10, 5.0273395  ;;  %v655_v41 = vsel %vm347_vm1, 1.0, %v873_v17  ;;  %v664_v43 = vsel %vm386_vm15, 1.0, %v873_v17 }
 0x157   : > { %v415_v39 = vsel %vm202_vm3, %v413_v29, %v412_v32  ;;  %v376_v40 = vadd.f32 %v660_v34, %v368_v33  ;;  %v420_v44 = vsel %vm209_vm4, %v418_v36, %v419_v37  ;;  %v353_v45 = vadd.f32 %v655_v41, %v653_v38 }
 0x158   : > { %v416_v42 = vsel %vm159_vm5, %v415_v39, 0.0  ;;  %vm504_vm9 = vcmp.gt.f32.partialorder %v1085_v28, %v420_v44  ;;  %v657_v47 = vsel %vm355_vm14, 1.0, %v873_v17  ;;  %v414_v48 = vsel %vm202_vm3, %v412_v32, %v413_v29 }
 0x159   : > { %vm502_vm7 = vcmp.gt.f32.partialorder %v1085_v28, %v416_v42  ;;  %v384_v46 = vadd.f32 %v662_v35, %v376_v40  ;;  %v361_v50 = vadd.f32 %v657_v47, %v353_v45  ;;  %vm363_vm5 = vcmp.gt.f32.partialorder %v1050_v8, -0.19891237 }
 0x15a   : > { %vm1123_vm1 = vmand %vm502_vm7, %vm504_vm9  ;;  %vm371_vm10 = vcmp.gt.f32.partialorder %v1050_v8, 0.19891237  ;;  %v659_v52 = vsel %vm363_vm5, 1.0, %v873_v17  ;;  %v666_v53 = vsel %vm394_vm6, 1.0, %v873_v17  ;;  %vm379_vm3 = vcmp.gt.f32.partialorder %v1050_v8, 0.6681786 }
 0x15b   : > { %v392_v51 = vadd.f32 %v664_v43, %v384_v46  ;;  %v369_v54 = vadd.f32 %v659_v52, %v361_v50  ;;  %vm503_vm11 = vcmp.gt.f32.partialorder %v1080_v26, %v414_v48  ;;  %v661_v56 = vsel %vm371_vm10, 1.0, %v873_v17 }
 0x15c   : > { %436 = vrot.lane.b32.xlu1 %v416_v42, %s871_s16  ;;  %v421_v57 = vsel %vm209_vm4, %v419_v37, %v418_v36  ;;  %vm387_vm12 = vcmp.gt.f32.partialorder %v1050_v8, 1.4966058  ;;  %v663_v61 = vsel %vm379_vm3, 1.0, %v873_v17  ;;  %vm395_vm14 = vcmp.gt.f32.partialorder %v1050_v8, 5.0273395 }
 0x15d   : > { %432 = vrot.lane.b32.xlu0 %v1080_v26, %s872_s17  ;;  %438 = vrot.lane.b32.xlu2 %v414_v48, %s871_s16  ;;  %v400_v55 = vadd.f32 %v666_v53, %v392_v51  ;;  %v377_v58 = vadd.f32 %v661_v56, %v369_v54  ;;  %v423_v59 = vsel %vm158_vm2, %v421_v57, 0.0  ;;  %vm408_vm4 = vcmp.ne.f32.partialorder %v1052_v10, %v1052_v10 }
 0x15e   : > { %vm505_vm8 = vcmp.gt.f32.partialorder %v1080_v26, %v423_v59  ;;  %v665_v30 = vsel %vm387_vm12, 1.0, %v873_v17  ;;  %vm1364_vm7 = vmmov 1   ;;  %v667_v3 = vsel %vm395_vm14, 1.0, %v873_v17 }
 0x15f   : > { %vm402_vm13 = vcmp.ge.f32.partialorder %v400_v55, 8.0  ;;  %v668_v60 = vadd.f32 -8.0, %v400_v55  ;;  %v385_v62 = vadd.f32 %v663_v61, %v377_v58  ;;  %vm1148_vm15 = vmand %vm503_vm11, %vm505_vm8  ;;  %vm409_vm3 = vcmp.ne.f32.partialorder %v1050_v8, %v1050_v8 }
 0x160   : > { %vm1162_vm9 = vmxor %vm1123_vm1, %vm1364_vm7  ;;  %v1382_v10 = vmov 0  ;;  %v1384_v11 = vmov 0  ;;  %v1397_v32 = vmov 0 }
 0x161   : > { %v406_v21 = vsel %vm402_vm13, %v668_v60, %v400_v55  ;;  %v393_v1 = vadd.f32 %v665_v30, %v385_v62  ;;  %v1379_v2 = vsel %vm1162_vm9, 4294967295, %v1378_v2  ;;  %vm1187_vm13 = vmxor %vm1148_vm15, %vm1364_vm7  ;;  %vm1386_vm15 = vcmp.ge.s32.totalorder %v973_v15, 1 }
 0x162   : > { %v1155_v0 = vsel %vm408_vm4, nan, %v406_v21  ;;  %v1383_v10 = vsel %vm1187_vm13, 4294967295, %v1382_v10 }
 0x163   : > { %vm496_vm2 = vcmp.eq.f32.partialorder %v1155_v0, 2.0  ;;  %vm498_vm6 = vcmp.eq.f32.partialorder %v1155_v0, 6.0  ;;  %v401_v5 = vadd.f32 %v667_v3, %v393_v1  ;;  %vm460_vm4 = vcmp.eq.f32.partialorder %v1155_v0, 0.0 }
 0x164   : > { %vm1167_vm5 = vmor %vm496_vm2, %vm498_vm6  ;;  %456 = vrot.lane.b32.xlu1 %v423_v59, %s872_s17  ;;  %vm462_vm2 = vcmp.eq.f32.partialorder %v1155_v0, 4.0 }
 0x165   : > { %v1381_v4 = vsel %vm1167_vm5, 4294967295, %v1380_v4  ;;  %454 = vrot.lane.b32.xlu0 %v420_v44, %s872_s17  ;;  %442 = vrot.lane.b32.xlu2 %v416_v42, %s872_s17  ;;  %vm403_vm1 = vcmp.ge.f32.partialorder %v401_v5, 8.0  ;;  %v669_v6 = vadd.f32 -8.0, %v401_v5  ;;  %vm478_vm5 = vcmp.eq.f32.partialorder %v1155_v0, 1.0 }
 0x167   : > { %v407_v7 = vsel %vm403_vm1, %v669_v6, %v401_v5 }
 0x168   : > { %v1180_v9 = vsel %vm409_vm3, nan, %v407_v7  ;;  %vm1212_vm3 = vmor %vm460_vm4, %vm462_vm2  ;;  %vm480_vm4 = vcmp.eq.f32.partialorder %v1155_v0, 5.0 }
 0x169   : > { %vm497_vm11 = vcmp.eq.f32.partialorder %v1180_v9, 2.0  ;;  %vm499_vm12 = vcmp.eq.f32.partialorder %v1180_v9, 6.0  ;;  %vm479_vm9 = vcmp.eq.f32.partialorder %v1180_v9, 1.0 }
 0x16a   : > { %vm1191_vm8 = vmor %vm497_vm11, %vm499_vm12  ;;  %vm461_vm11 = vcmp.eq.f32.partialorder %v1180_v9, 0.0  ;;  %vm463_vm12 = vcmp.eq.f32.partialorder %v1180_v9, 4.0 }
 0x16b   : > { %v1385_v11 = vsel %vm1191_vm8, 4294967295, %v1384_v11  ;;  %vm1224_vm2 = vmor %vm461_vm11, %vm463_vm12  ;;  %vm481_vm8 = vcmp.eq.f32.partialorder %v1180_v9, 5.0 }
 0x16c   : > { %448 = vrot.lane.b32.xlu1 %v420_v44, %s871_s16 }
 0x16d   : > { %444 = vrot.lane.b32.xlu0 %v414_v48, %s872_s17  ;;  %450 = vrot.lane.b32.xlu2 %v423_v59, %s871_s16 }
 0x1af   : > { %v431_v8 = vpop.permute.xlu2 %430 }
 0x1b0   : > { %v434_v17 = vsel %vm1386_vm15, %v431_v8, 0.0 }
 0x1b1   : > { %vm468_vm1 = vcmp.gt.f32.partialorder %v1085_v28, %v434_v17 }
 0x1b7   : > { %v439_v14 = vpop.permute.xlu2 %438 }
 0x1bf   : > { %v443_v24 = vpop.permute.xlu2 %442 }
 0x1c6   : > { %v427_v12 = vpop.permute.xlu1 %426 }
 0x1c7   : > { %v425_v13 = vpop.permute.xlu0 %424  ;;  %v429_v18 = vsel %vm1363_vm0, %v427_v12, 0.0  ;;  %v451_v42 = vpop.permute.xlu2 %450 }
 0x1c8   : > { %v428_v16 = vsel %vm1363_vm0, %v425_v13, 0.0  ;;  %vm467_vm10 = vcmp.gt.f32.partialorder %v1080_v26, %v429_v18 }
 0x1c9   : > { %vm466_vm6 = vcmp.gt.f32.partialorder %v1085_v28, %v428_v16 }
 0x1ca   : > { %vm470_vm14 = vmand %vm466_vm6, %vm468_vm1 }
 0x1cb   : > { %vm1242_vm6 = vmor %vm478_vm5, %vm480_vm4 }
 0x1cc   : > { %v1398_v32 = vsel %vm1242_vm6, 4294967295, %v1397_v32  ;;  %vm1246_vm1 = vmor %vm479_vm9, %vm481_vm8 }
 0x1ce   : > { %v437_v19 = vpop.permute.xlu1 %436 }
 0x1cf   : > { %v433_v20 = vpop.permute.xlu0 %432 }
 0x1d0   : > { %v435_v23 = vsel %vm1386_vm15, %v433_v20, 0.0  ;;  %vm1391_vm15 = vmmov 1  }
 0x1d1   : > { %vm469_vm0 = vcmp.gt.f32.partialorder %v1080_v26, %v435_v23  ;;  %vm1231_vm13 = vmxor %vm470_vm14, %vm1391_vm15 }
 0x1d2   : > { %vm471_vm7 = vmand %vm467_vm10, %vm469_vm0  ;;  %vm1394_vm0 = vcmp.lt.s32.totalorder %v973_v15, 15 }
 0x1d3   : > { %v441_v29 = vsel %vm1394_vm0, %v439_v14, 0.0  ;;  %vm1238_vm10 = vmxor %vm471_vm7, %vm1391_vm15  ;;  %vm1401_vm7 = vcmp.ge.s32.totalorder %v973_v15, 1 }
 0x1d4   : > { %vm485_vm5 = vcmp.gt.f32.partialorder %v1080_v26, %v441_v29  ;;  %vm1402_vm11 = vmmov %vm1394_vm0 }
 0x1d5   : > { %v440_v37 = vsel %vm1402_vm11, %v437_v19, 0.0  ;;  %vm475_vm9 = vmand %vm1238_vm10, %vm1224_vm2 }
 0x1d6   : > { %v457_v34 = vpop.permute.xlu1 %456  ;;  %vm1403_vm12 = vmmov %vm1401_vm7  ;;  %vm484_vm14 = vcmp.gt.f32.partialorder %v1085_v28, %v440_v37  ;;  %v477_v39 = vsel %vm475_vm9, 0.0, %v1080_v26  ;;  %vm1406_vm9 = vnez %v1385_v11 }
 0x1d7   : > { %v459_v35 = vsel %vm1401_vm7, %v457_v34, 0.0  ;;  %v455_v36 = vpop.permute.xlu0 %454  ;;  %vm1404_vm2 = vmmov %vm1403_vm12 }
 0x1d8   : > { %vm487_vm8 = vcmp.gt.f32.partialorder %v1080_v26, %v459_v35  ;;  %v458_v38 = vsel %vm1403_vm12, %v455_v36, 0.0  ;;  %v446_v40 = vsel %vm1404_vm2, %v443_v24, 0.0 }
 0x1d9   : > { %vm489_vm4 = vmand %vm485_vm5, %vm487_vm8  ;;  %vm486_vm0 = vcmp.gt.f32.partialorder %v1085_v28, %v458_v38  ;;  %vm514_vm5 = vcmp.eq.f32.partialorder %v1155_v0, 3.0  ;;  %vm516_vm8 = vcmp.eq.f32.partialorder %v1155_v0, 7.0  ;;  %vm520_vm2 = vcmp.gt.f32.partialorder %v1085_v28, %v446_v40 }
 0x1da   : > { %vm491_vm7 = vmxor %vm489_vm4, %vm1391_vm15  ;;  %vm1405_vm4 = vnez %v1383_v10 }
 0x1db   : > { %vm493_vm11 = vmand %vm491_vm7, %vm1246_vm1  ;;  %vm515_vm1 = vcmp.eq.f32.partialorder %v1180_v9, 3.0  ;;  %vm517_vm7 = vcmp.eq.f32.partialorder %v1180_v9, 7.0 }
 0x1dc   : > { %v495_v41 = vsel %vm493_vm11, 0.0, %v477_v39  ;;  %vm488_vm10 = vmand %vm484_vm14, %vm486_vm0  ;;  %vm1409_vm0 = vnez %v1398_v32 }
 0x1dd   : > { %vm490_vm12 = vmxor %vm488_vm10, %vm1391_vm15  ;;  %vm1412_vm10 = vcmp.lt.s32.totalorder %v973_v15, 15 }
 0x1de   : > { %vm1407_vm6 = vmand %vm1405_vm4, %vm1406_vm9  ;;  %v449_v45 = vpop.permute.xlu1 %448 }
 0x1df   : > { %v513_v43 = vsel %vm1407_vm6, 0.0, %v495_v41  ;;  %vm1408_vm14 = vmand %vm1231_vm13, %vm1212_vm3  ;;  %v452_v48 = vsel %vm1412_vm10, %v449_v45, 0.0  ;;  %v445_v49 = vpop.permute.xlu0 %444  ;;  %vm1414_vm13 = vnez %v1379_v2  ;;  %vm1415_vm3 = vnez %v1381_v4 }
 0x1e0   : > { %v476_v44 = vsel %vm1408_vm14, 0.0, %v1085_v28  ;;  %vm492_vm11 = vmand %vm490_vm12, %vm1409_vm0  ;;  %vm522_vm9 = vcmp.gt.f32.partialorder %v1085_v28, %v452_v48 }
 0x1e1   : > { %v494_v46 = vsel %vm492_vm11, 0.0, %v476_v44  ;;  %vm1295_vm6 = vmor %vm514_vm5, %vm516_vm8  ;;  %vm1419_vm5 = vcmp.ge.s32.totalorder %v973_v15, 1 }
 0x1e2   : > { %vm1413_vm4 = vmmov %vm1412_vm10  ;;  %v447_v53 = vsel %vm1419_vm5, %v445_v49, 0.0 }
 0x1e3   : > { %v453_v50 = vsel %vm1413_vm4, %v451_v42, 0.0  ;;  %vm1416_vm12 = vmand %vm1414_vm13, %vm1415_vm3  ;;  %vm521_vm0 = vcmp.gt.f32.partialorder %v1080_v26, %v447_v53 }
 0x1e4   : > { %v512_v51 = vsel %vm1416_vm12, 0.0, %v494_v46  ;;  %vm1309_vm14 = vmor %vm515_vm1, %vm517_vm7  ;;  %vm523_vm1 = vcmp.gt.f32.partialorder %v1080_v26, %v453_v50 }
 0x1e5   : > { %vm524_vm8 = vmand %vm520_vm2, %vm522_vm9 }
 0x1e6   : > { %vm526_vm11 = vmxor %vm524_vm8, %vm1391_vm15 }
 0x1e7   : > { %vm528_vm7 = vmand %vm526_vm11, %vm1295_vm6 }
 0x1e8   : > { %v530_v15 = vsel %vm528_vm7, 0.0, %v512_v51  ;;  %vm525_vm10 = vmand %vm521_vm0, %vm523_vm1 }
 0x1e9   : > { %532 = vst [vmem:[%s150_s25] sm:$0xff] %v530_v15  ;;  %vm527_vm4 = vmxor %vm525_vm10, %vm1391_vm15 }
 0x1ea   : > { %vm529_vm2 = vmand %vm527_vm4, %vm1309_vm14 }
 0x1eb   : > { %v531_v28 = vsel %vm529_vm2, 0.0, %v513_v43 }
 0x1ec   : > { %533 = vst [vmem:[%s150_s25 + $0x8] sm:$0xff] %v531_v28 }
 0x1ed   : > { %812 = shalt.err (!%p809_p13)
}
 0x1ee   : > { %s875_s5 = smov 128   ;;  %s876_s15 = smov 8  }
 0x1ef   : > { %679 = dma.vmem_to_hbm [thread:$0]  (%p938_p9), %s550_s26, 256, %s552_s27, %s535_s28, %s875_s5, %s875_s5, %s876_s15  }
 0x1f0 PF: > { %s566_s16 = sand.u32 1, %s847_s6   ;;  %p686_p0 = pnand %p639_p12, %p945_p11 }
 0x1f1   : > { %s567_s17 = scalar_lea.sflag [#allocation4], %s566_s16 }
 0x1f2   : > { %p687_p1 = pneg %p686_p0 }
 0x1f4   : > { %842 = dma.done.wait (%p687_p1), %s567_s17, 256  }
 0x1f5   : > { %844 = vsyncadd (%p687_p1), %s567_s17, 4294967040  ;;  %s17_s11 = sadd.s32 1, %s867_s11   ;;  %s1420_s6 = smov %s851_s7 }
 0x1f6   : > { %p14_p2 = scmp.ge.s32.totalorder %s17_s11, 4   ;;  %s1421_s7 = smov %s855_s8 }
 0x1f7   : > { %s1422_s8 = smov %s943_s20  ;;  %s1423_s9 = smov %s863_s10 }
 0x1f8   : > { %s1424_s10 = smov %s1426_s14  ;;  %16 = sbr.rel (!%p14_p2) target bundleno = 6 (0x6), region = 72 }
 0x1fd   :  { %573 = vsyncpa [#allocation3], 1 }
 0x1fe   :  { %575 = vsyncpa [#allocation3 + $0x1], 1 }
 0x1ff   :  { %576 = vsyncpa [#allocation4], 1 }
 0x200   :  { %578 = vsyncpa [#allocation4 + $0x1], 1 }

</bundles_post_ra>
